<compile_context>
chip_gen: v7x
topology: tpu7x:2x2x1
jax: 0.10.0
libtpu: 0.0.40
codegen_flags: <defaults>
</compile_context>

<pallas_src>
import functools

import jax
import jax.numpy as jnp
from jax.experimental import pallas as pl
from jax.experimental.pallas import tpu as pltpu


def mlp_kernel(x_ref, w1_ref, b1_ref, w2_ref, b2_ref, w3_ref, b3_ref, o_ref):
    # In-kernel bf16 casts (weights are tiny; x cast rides idle VPU slots).
    x = x_ref[...].astype(jnp.bfloat16)                       # (TB, 44)
    w1 = w1_ref[...].astype(jnp.bfloat16)                     # (44, 24)
    w2 = w2_ref[...].astype(jnp.bfloat16)                     # (24, 10)
    w3 = w3_ref[...].astype(jnp.bfloat16)                     # (1, 10)

    # Layer 1: Linear(44->24) + ReLU, f32 accumulate, bf16 intermediate.
    h1 = jnp.dot(x, w1, preferred_element_type=jnp.float32) + b1_ref[...]
    h1 = jnp.maximum(h1, 0.0).astype(jnp.bfloat16)            # (TB, 24) bf16

    # Layer 2: Linear(24->10) + ReLU.
    h2 = jnp.dot(h1, w2, preferred_element_type=jnp.float32) + b2_ref[...]
    h2 = jnp.maximum(h2, 0.0).astype(jnp.bfloat16)            # (TB, 10) bf16

    # Layer 3: Linear(10->1) + Sigmoid, computed in transposed orientation.
    # Contract h2's feature dim against w3's feature dim (trans-B dot_general)
    # so the result is already the lane-dense (1, TB) block — no explicit
    # f32 transpose of h2 on the XLU.
    z = jax.lax.dot_general(
        w3, h2,
        dimension_numbers=(((1,), (1,)), ((), ())),
        preferred_element_type=jnp.float32) + b3_ref[0, 0]
    o_ref[...] = jax.nn.sigmoid(z)                             # (1, TB) f32


@functools.partial(jax.jit, static_argnames=("block_b",))
def mymode_forward(x, w1, b1, w2, b2, w3, b3, *, block_b=None):
    """x: (B, 44) f32.  w1 (44,24), w2 (24,10) stored (in,out); w3 (1,10) kept
    in torch (out,in) layout; biases b1 (1,24), b2 (1,10), b3 (1,1).
    Returns (B, 1) f32."""
    B = x.shape[0]
    if block_b is None:
        # >= 2 tiles keeps both v7x TensorCores busy on the "parallel" axis;
        # cap 4096 keeps lane-padded intermediates under v5e's 16 MiB scoped
        # VMEM default.  Must stay a multiple of 128 (output lane dim).
        half = -(-B // 2)
        block_b = max(128, min(4096, ((half + 127) // 128) * 128))
    n_tiles = pl.cdiv(B, block_b)

    out = pl.pallas_call(
        mlp_kernel,
        out_shape=jax.ShapeDtypeStruct((1, B), jnp.float32),
        grid=(n_tiles,),
        in_specs=[
            pl.BlockSpec((block_b, 44), lambda i: (i, 0)),       # streamed x tile (f32)
            pl.BlockSpec((44, 24), lambda i: (0, 0)),            # VMEM-resident params
            pl.BlockSpec((1, 24), lambda i: (0, 0)),
            pl.BlockSpec((24, 10), lambda i: (0, 0)),
            pl.BlockSpec((1, 10), lambda i: (0, 0)),
            pl.BlockSpec((1, 10), lambda i: (0, 0)),
            pl.BlockSpec(memory_space=pltpu.MemorySpace.SMEM),   # scalar b3
        ],
        out_specs=pl.BlockSpec((1, block_b), lambda i: (0, i)),  # lane-dense output
        compiler_params=pltpu.CompilerParams(
            dimension_semantics=("parallel",)),
    )(x, w1, b1, w2, b2, w3, b3)

    # (1, B) -> (B, 1): same flat order, pure reshape of the tiny output.
    return out.reshape(B, 1)


def init_params(key):
    # Deterministic synthetic parameters matching nn.Linear shapes.
    # w1/w2 stored transposed (in, out) so the kernel computes x @ W directly;
    # w3 kept in torch (out, in) = (1, 10) layout for the trans-B final dot.
    k1, k2, k3, k4, k5, k6 = jax.random.split(key, 6)
    w1 = jax.random.normal(k1, (44, 24), jnp.float32) * 0.1
    b1 = jax.random.normal(k2, (1, 24), jnp.float32) * 0.1
    w2 = jax.random.normal(k3, (24, 10), jnp.float32) * 0.1
    b2 = jax.random.normal(k4, (1, 10), jnp.float32) * 0.1
    w3 = jax.random.normal(k5, (1, 10), jnp.float32) * 0.1
    b3 = jax.random.normal(k6, (1, 1), jnp.float32) * 0.1
    return w1, b1, w2, b2, w3, b3


if __name__ == "__main__":
    key = jax.random.PRNGKey(0)
    kx, kp = jax.random.split(key)
    B = 300   # not a multiple of the tile -> exercises masked edge blocks + 2 tiles
    x = jax.random.normal(kx, (B, 44), jnp.float32)
    params = init_params(kp)

    out = jax.block_until_ready(mymode_forward(x, *params))
    assert out.shape == (B, 1)

    w1, b1, w2, b2, w3, b3 = params
    f32 = jnp.float32

    # Reference applying the same bf16 rounding the kernel uses (operands and
    # h1/h2 intermediates in bf16, accumulation/elementwise in f32).
    xb = x.astype(jnp.bfloat16).astype(f32)
    w1b = w1.astype(jnp.bfloat16).astype(f32)
    w2b = w2.astype(jnp.bfloat16).astype(f32)
    w3b = w3.astype(jnp.bfloat16).astype(f32)
    h1 = jnp.maximum(xb @ w1b + b1, 0.0).astype(jnp.bfloat16).astype(f32)
    h2 = jnp.maximum(h1 @ w2b + b2, 0.0).astype(jnp.bfloat16).astype(f32)
    ref_bf16 = jax.nn.sigmoid(h2 @ w3b.T + b3)
    assert jnp.allclose(out, ref_bf16, atol=2e-3, rtol=2e-3)

    # Full-f32 reference (exact module semantics).
    h1f = jnp.maximum(x @ w1 + b1, 0.0)
    h2f = jnp.maximum(h1f @ w2 + b2, 0.0)
    ref_f32 = jax.nn.sigmoid(h2f @ w3.T + b3)
    assert jnp.allclose(out, ref_f32, atol=2e-2)

    print("KERNEL_OK")
</pallas_src>

<mosaic_0001>
module attributes {stable_mosaic.version = 11 : i64} {
  func.func @mlp_kernel(%arg0: i32, %arg1: memref<256x44xf32, #tpu.memory_space<vmem>>, %arg2: memref<44x24xf32, #tpu.memory_space<vmem>>, %arg3: memref<1x24xf32, #tpu.memory_space<vmem>>, %arg4: memref<24x10xf32, #tpu.memory_space<vmem>>, %arg5: memref<1x10xf32, #tpu.memory_space<vmem>>, %arg6: memref<1x10xf32, #tpu.memory_space<vmem>>, %arg7: memref<1x1xf32, #tpu.memory_space<smem>>, %arg8: memref<1x256xf32, #tpu.memory_space<vmem>>) attributes {dimension_semantics = [#tpu.dimension_semantics<parallel>], iteration_bounds = array<i64: 2>, scalar_prefetch = 0 : i64, scratch_operands = 0 : i64, tpu.core_type = #tpu.core_type<tc>, window_params = [{transform_indices = @transform_0, window_bounds = array<i64: 256, 44>}, {pipeline_mode = #tpu.pipeline_mode<synchronous>, transform_indices = @transform_1, window_bounds = array<i64: 44, 24>}, {pipeline_mode = #tpu.pipeline_mode<synchronous>, transform_indices = @transform_2, window_bounds = array<i64: 1, 24>}, {pipeline_mode = #tpu.pipeline_mode<synchronous>, transform_indices = @transform_3, window_bounds = array<i64: 24, 10>}, {pipeline_mode = #tpu.pipeline_mode<synchronous>, transform_indices = @transform_4, window_bounds = array<i64: 1, 10>}, {pipeline_mode = #tpu.pipeline_mode<synchronous>, transform_indices = @transform_5, window_bounds = array<i64: 1, 10>}, {transform_indices = @transform_6, window_bounds = array<i64: 1, 1>}, {transform_indices = @transform_7, window_bounds = array<i64: 1, 256>}]} {
    %c0 = arith.constant 0 : index
    %c0_0 = arith.constant 0 : index
    %0 = vector.load %arg1[%c0, %c0_0] : memref<256x44xf32, #tpu.memory_space<vmem>>, vector<256x44xf32>
    %1 = arith.truncf %0 : vector<256x44xf32> to vector<256x44xbf16>
    %c0_1 = arith.constant 0 : index
    %c0_2 = arith.constant 0 : index
    %2 = vector.load %arg2[%c0_1, %c0_2] : memref<44x24xf32, #tpu.memory_space<vmem>>, vector<44x24xf32>
    %3 = arith.truncf %2 : vector<44x24xf32> to vector<44x24xbf16>
    %c0_3 = arith.constant 0 : index
    %c0_4 = arith.constant 0 : index
    %4 = vector.load %arg4[%c0_3, %c0_4] : memref<24x10xf32, #tpu.memory_space<vmem>>, vector<24x10xf32>
    %5 = arith.truncf %4 : vector<24x10xf32> to vector<24x10xbf16>
    %c0_5 = arith.constant 0 : index
    %c0_6 = arith.constant 0 : index
    %6 = vector.load %arg6[%c0_5, %c0_6] : memref<1x10xf32, #tpu.memory_space<vmem>>, vector<1x10xf32>
    %7 = arith.truncf %6 : vector<1x10xf32> to vector<1x10xbf16>
    %cst = arith.constant dense<0.000000e+00> : vector<256x24xf32>
    %8 = tpu.matmul %1, %3, %cst {dimension_numbers = #tpu.dot_dimension_numbers<[1], [0], [0], [1], [0, 0, 1, 1], [], []>} : vector<256x44xbf16>, vector<44x24xbf16>, vector<256x24xf32> -> vector<256x24xf32>
    %c0_7 = arith.constant 0 : index
    %c0_8 = arith.constant 0 : index
    %9 = vector.load %arg3[%c0_7, %c0_8] : memref<1x24xf32, #tpu.memory_space<vmem>>, vector<1x24xf32>
    %10 = vector.broadcast %9 : vector<1x24xf32> to vector<256x24xf32>
    %11 = arith.addf %8, %10 : vector<256x24xf32>
    %cst_9 = arith.constant 0.000000e+00 : f32
    %12 = vector.broadcast %cst_9 : f32 to vector<256x24xf32>
    %13 = arith.maximumf %11, %12 : vector<256x24xf32>
    %14 = arith.truncf %13 : vector<256x24xf32> to vector<256x24xbf16>
    %cst_10 = arith.constant dense<0.000000e+00> : vector<256x10xf32>
    %15 = tpu.matmul %14, %5, %cst_10 {dimension_numbers = #tpu.dot_dimension_numbers<[1], [0], [0], [1], [0, 0, 1, 1], [], []>} : vector<256x24xbf16>, vector<24x10xbf16>, vector<256x10xf32> -> vector<256x10xf32>
    %c0_11 = arith.constant 0 : index
    %c0_12 = arith.constant 0 : index
    %16 = vector.load %arg5[%c0_11, %c0_12] : memref<1x10xf32, #tpu.memory_space<vmem>>, vector<1x10xf32>
    %17 = vector.broadcast %16 : vector<1x10xf32> to vector<256x10xf32>
    %18 = arith.addf %15, %17 : vector<256x10xf32>
    %cst_13 = arith.constant 0.000000e+00 : f32
    %19 = vector.broadcast %cst_13 : f32 to vector<256x10xf32>
    %20 = arith.maximumf %18, %19 : vector<256x10xf32>
    %21 = arith.truncf %20 : vector<256x10xf32> to vector<256x10xbf16>
    %cst_14 = arith.constant dense<0.000000e+00> : vector<1x256xf32>
    %22 = tpu.matmul %7, %21, %cst_14 {dimension_numbers = #tpu.dot_dimension_numbers<[1], [1], [0], [0], [0, 0, 1, 0], [], []>} : vector<1x10xbf16>, vector<256x10xbf16>, vector<1x256xf32> -> vector<1x256xf32>
    %c0_15 = arith.constant 0 : index
    %c0_16 = arith.constant 0 : index
    %23 = memref.load %arg7[%c0_15, %c0_16] : memref<1x1xf32, #tpu.memory_space<smem>>
    %24 = vector.broadcast %23 : f32 to vector<1x256xf32>
    %25 = arith.addf %22, %24 : vector<1x256xf32>
    %26 = arith.negf %25 : vector<1x256xf32>
    %27 = math.exp %26 : vector<1x256xf32>
    %cst_17 = arith.constant 1.000000e+00 : f32
    %28 = vector.broadcast %cst_17 : f32 to vector<1x256xf32>
    %29 = arith.addf %28, %27 : vector<1x256xf32>
    %30 = arith.divf %28, %29 : vector<1x256xf32>
    %c0_18 = arith.constant 0 : index
    %c0_19 = arith.constant 0 : index
    %31 = vector.load %arg8[%c0_18, %c0_19] : memref<1x256xf32, #tpu.memory_space<vmem>>, vector<1x256xf32>
    tpu.vector_store %arg8[%c0_18, %c0_19], %30 {strides = array<i32>} : memref<1x256xf32, #tpu.memory_space<vmem>>, vector<1x256xf32>,
    return
  }
  func.func @transform_0(%arg0: i32) -> (i32, i32) {
    %c0_i32 = arith.constant 0 : i32
    %c0_i32_0 = arith.constant 0 : i32
    return %arg0, %c0_i32 : i32, i32
  }
  func.func @transform_1(%arg0: i32) -> (i32, i32) {
    %c0_i32 = arith.constant 0 : i32
    %c0_i32_0 = arith.constant 0 : i32
    %c0_i32_1 = arith.constant 0 : i32
    return %c0_i32, %c0_i32_0 : i32, i32
  }
  func.func @transform_2(%arg0: i32) -> (i32, i32) {
    %c0_i32 = arith.constant 0 : i32
    %c0_i32_0 = arith.constant 0 : i32
    %c0_i32_1 = arith.constant 0 : i32
    return %c0_i32, %c0_i32_0 : i32, i32
  }
  func.func @transform_3(%arg0: i32) -> (i32, i32) {
    %c0_i32 = arith.constant 0 : i32
    %c0_i32_0 = arith.constant 0 : i32
    %c0_i32_1 = arith.constant 0 : i32
    return %c0_i32, %c0_i32_0 : i32, i32
  }
  func.func @transform_4(%arg0: i32) -> (i32, i32) {
    %c0_i32 = arith.constant 0 : i32
    %c0_i32_0 = arith.constant 0 : i32
    %c0_i32_1 = arith.constant 0 : i32
    return %c0_i32, %c0_i32_0 : i32, i32
  }
  func.func @transform_5(%arg0: i32) -> (i32, i32) {
    %c0_i32 = arith.constant 0 : i32
    %c0_i32_0 = arith.constant 0 : i32
    %c0_i32_1 = arith.constant 0 : i32
    return %c0_i32, %c0_i32_0 : i32, i32
  }
  func.func @transform_6(%arg0: i32) -> (i32, i32) {
    %c0_i32 = arith.constant 0 : i32
    %c0_i32_0 = arith.constant 0 : i32
    %c0_i32_1 = arith.constant 0 : i32
    return %c0_i32, %c0_i32_0 : i32, i32
  }
  func.func @transform_7(%arg0: i32) -> (i32, i32) {
    %c0_i32 = arith.constant 0 : i32
    %c0_i32_0 = arith.constant 0 : i32
    return %c0_i32, %arg0 : i32, i32
  }
}

</mosaic_0001>

<bundles_post_ra>
// kernel: mymode_forward.1
= control target key start
LH: loop header
LB: loop body
LE: loop exit
PB: predicated region body
PF: predicated region fallthrough
CT: control target
= control target key end

     0   :  { %s1795_s0 = inlined_call_operand.vmem [shape: f32[300,44], index: 0, kind: input, shape index: {}]   ;;  %s1796_s1 = inlined_call_operand.vmem [shape: f32[44,24], index: 1, kind: input, shape index: {}]   ;;  %s1797_s2 = inlined_call_operand.vmem [shape: f32[1,24], index: 2, kind: input, shape index: {}]   ;;  %s1798_s3 = inlined_call_operand.vmem [shape: f32[24,10], index: 3, kind: input, shape index: {}]   ;;  %s1799_s4 = inlined_call_operand.vmem [shape: f32[1,10], index: 4, kind: input, shape index: {}]   ;;  %s1800_s5 = inlined_call_operand.vmem [shape: f32[1,10], index: 5, kind: input, shape index: {}]   ;;  %s1801_s6 = inlined_call_operand.<no memory space> [shape: f32[1,1], index: 6, kind: input, shape index: {}]   ;;  %s1802_s7 = inlined_call_operand.hbm [shape: f32[1,300], index: 7, kind: output, shape index: {}]  }
   0x1   :  { %12 = sst [smem:[#allocation2]] %s1801_s6 }
   0x2   :  { %13 = vsyncpa [#allocation4], 0 }
   0x3   :  { %15 = vsyncpa [#allocation4 + $0x1], 0  ;;  %s1464_s26 = smov 0   ;;  %s1466_s27 = smov 0  }
   0x4   :  { %s1468_s28 = smov 0   ;;  %s1470_s29 = smov 0  }
   0x5 LB: > { %s1485_s6 = sadd.s32 4294967295, %s1417_s29   ;;  %s1117_s30 = sadd.s32 4294967294, %s1417_s29   ;;  %s1417_s29 = sphi %s1470_s29, %s1808_s29   ;;  %s1413_s28 = sphi %s1468_s28, %s1807_s28   ;;  %s1409_s27 = sphi %s1466_s27, %s1806_s27   ;;  %s1405_s26 = sphi %s1464_s26, %s1805_s26  }
   0x6   : > { %s1489_s8 = sadd.s32 1, %s1417_s29   ;;  %s180_s9 = sadd.s32 1, %s1413_s28 }
   0x7   : > { %s177_s10 = ssub.s32 %s1417_s29, %s1489_s8  ;;  %p190_p0 = scmp.ne.s32.totalorder %s1413_s28, %s1409_s27 }
   0x8   : > { %p178_p1 = scmp.eq.s32.totalorder %s177_s10, 0  ;;  %p191_p2 = scmp.eq.s32.totalorder %s1485_s6, 1 }
   0x9   : > { %p196_p3 = scmp.ne.s32.totalorder %s1409_s27, %s1405_s26  ;;  %p197_p4 = scmp.eq.s32.totalorder %s1117_s30, 1 }
   0xa   : > { %s1500_s11 = scalar_select %p178_p1, %s1413_s28, %s180_s9  }
   0xb   : > { %p1502_p5 = por %p191_p2, %p190_p0  ;;  %p1506_p6 = por %p197_p4, %p196_p3 }
   0xc   : > { %p1120_p7 = scmp.ge.s32.totalorder %s1417_s29, 1  ;;  %p250_p8 = scmp.lt.s32.totalorder %s1417_s29, 3 }
   0xe   : > { %p251_p9 = pnand %p1120_p7, %p250_p8 }
   0xf   : > { %v354_v0 = vld [vmem:[%s1796_s1] sm:$0xff] (!%p251_p9)  ;;  %v355_v1 = vld [vmem:[%s1796_s1 + $0x8] sm:$0xff] (!%p251_p9)  ;;  %v356_v2 = vld [vmem:[%s1796_s1 + $0x10] sm:$0xff] (!%p251_p9)  ;;  %s1522_s20 = sshll.u32 (!%p251_p9), %s1485_s6, 5  ;;  %vm426_vm0 = vcmask (!%p251_p9), 1045504   ;;  %vm377_vm1 = vcmask (!%p251_p9), 359424  }
  0x10   : > { %254 = sbr.rel (%p251_p9) target bundleno = 845 (0x34d), region = 48  ;;  %v360_v3 = vpack.c.bf16 (!%p251_p9), %v355_v1, %v354_v0  ;;  %v357_v4 = vld [vmem:[%s1796_s1 + $0x18] sm:$0xff] (!%p251_p9)  ;;  %p291_p10 = scmp.lt.s32.totalorder (!%p251_p9), %s1522_s20, 37  ;;  %v358_v6 = vld [vmem:[%s1796_s1 + $0x20] sm:$0xff] (!%p251_p9)  ;;  %v359_v7 = vld [vmem:[%s1796_s1 + $0x28] sm:$0xf] (!%p251_p9) }
  0x11   : > { %v361_v5 = vpack.c.bf16 (!%p251_p9), %v357_v4, %v356_v2  ;;  %v362_v8 = vpack.c.bf16 (!%p251_p9), %v359_v7, %v358_v6  ;;  %v363_v58 = vld [vmem:[%s1798_s3] sm:$0xff] (!%p251_p9)  ;;  %v364_v59 = vld [vmem:[%s1798_s3 + $0x8] sm:$0xff] (!%p251_p9)  ;;  %v365_v61 = vld [vmem:[%s1798_s3 + $0x10] sm:$0xff] (!%p251_p9)  ;;  %vm695_vm2 = vcmask (!%p251_p9), 1043456   ;;  %vm646_vm3 = vcmask (!%p251_p9), 195584   ;;  %s283_s15 = sand.u32 (!%p251_p9), 1, %s1409_s27  }
  0x12   : > { %1224 = vmatprep.subr.bf16.mxu0 (!%p251_p9), %v360_v3  ;;  %v366_v60 = vpack.c.bf16 (!%p251_p9), %v364_v59, %v363_v58  ;;  %v367_v62 = vpack.c.bf16 (!%p251_p9), %v365_v61, %v365_v61  ;;  %v1600_v0 = vld [vmem:[%s1797_s2] ss:$0 sm:$0xff] (!%p251_p9)  ;;  %vm910_vm4 = vcmask (!%p251_p9), 80896   ;;  %s1121_s17 = sshll.u32 (!%p251_p9), %s283_s15, 1  ;;  %s1741_s19 = scalar_lea.sflag (!%p251_p9), [#allocation4], %s283_s15 }
  0x13   : > { %1225 = vmatpush3.bf16.msra.mxu0 (!%p251_p9), %v360_v3  ;;  %v428_v14 = vsel (!%p251_p9), %vm426_vm0, %v362_v8, 0  ;;  %s285_s18 = scalar_lea.vmem (!%p251_p9), [#allocation3], %s1121_s17 }
  0x14   : > { %1226 = vmatprep.subr.bf16.mxu0 (!%p251_p9), %v361_v5  ;;  %1262 = vmatprep.subr.bf16.mxu1 (!%p251_p9), %v366_v60  ;;  %v697_v63 = vsel (!%p251_p9), %vm695_vm2, %v367_v62, 0 }
  0x15   : > { %1263 = vmatpush3.bf16.msra.mxu1 (!%p251_p9), %v366_v60 }
  0x16   : > { %1299 = vmatprep.subr.msk.bf16.mxu1 (!%p251_p9), %vm695_vm2, %v367_v62 }
  0x17   : > { %s292_s9 = scalar_select %p291_p10, %s1522_s20, 37  ;;  %1227 = vmatpush3.bf16.msra.mxu0 %v361_v5 }
  0x18   : > { %1298 = vmatprep.subr.msk.bf16.mxu0 %vm426_vm0, %v362_v8  ;;  %s1162_s21 = sshll.u32 (%p1502_p5), %s1485_s6, 1 }
  0x19   : > { %s1123_s10 = sshll.u32 %s292_s9, 3  ;;  %1265 = vmatpush3.bf16.msra.mxu1 %v697_v63  ;;  %s1047_s22 = ssub.s32 (%p1502_p5), 3, %s1162_s21 }
  0x1a   : > { %s1538_s16 = scalar_lea.vmem %s1795_s0, %s1123_s10  ;;  %p1048_p11 = scmp.lt.s32.totalorder (%p1502_p5), %s1047_s22, 2 }
  0x1b   : > { %v306_v9 = vld [vmem:[%s1538_s16] sm:$0xff]  ;;  %v307_v10 = vld [vmem:[%s1538_s16 + $0x8] sm:$0xff]  ;;  %v308_v12 = vld [vmem:[%s1538_s16 + $0x10] sm:$0xff]  ;;  %1229 = vmatpush3.bf16.msra.mxu0 %v428_v14 }
  0x1c   : > { %v338_v11 = vpack.c.bf16 %v307_v10, %v306_v9  ;;  %v309_v13 = vld [vmem:[%s1538_s16 + $0x18] sm:$0xff]  ;;  %v310_v15 = vld [vmem:[%s1538_s16 + $0x20] sm:$0xff]  ;;  %v311_v16 = vld [vmem:[%s1538_s16 + $0x28] sm:$0xff] }
  0x1d   : > { %v339_v17 = vpack.c.bf16 %v309_v13, %v308_v12  ;;  %v340_v18 = vpack.c.bf16 %v311_v16, %v310_v15  ;;  %v312_v19 = vld [vmem:[%s1538_s16 + $0x30] sm:$0xff]  ;;  %v313_v20 = vld [vmem:[%s1538_s16 + $0x38] sm:$0xff]  ;;  %v314_v21 = vld [vmem:[%s1538_s16 + $0x40] sm:$0xff] }
  0x1e   : > { %1230 = vmatprep.mubr.msk.bf16.mxu0 %vm377_vm1, %v338_v11  ;;  %v315_v22 = vld [vmem:[%s1538_s16 + $0x48] sm:$0xff]  ;;  %v341_v23 = vpack.c.bf16 %v313_v20, %v312_v19  ;;  %v316_v25 = vld [vmem:[%s1538_s16 + $0x50] sm:$0xff]  ;;  %v317_v26 = vld [vmem:[%s1538_s16 + $0x58] sm:$0xff] }
  0x1f   : > { %1231 = vmatmul.mubr.msk.bf16.vlgmr.msra.gmra.mrb[0].mxu0 %vm377_vm1, %v339_v17  ;;  %v342_v24 = vpack.c.bf16 %v315_v22, %v314_v21  ;;  %v318_v27 = vld [vmem:[%s1538_s16 + $0x60] sm:$0xff]  ;;  %v319_v28 = vld [vmem:[%s1538_s16 + $0x68] sm:$0xff]  ;;  %v343_v29 = vpack.c.bf16 %v317_v26, %v316_v25  ;;  %v320_v31 = vld [vmem:[%s1538_s16 + $0x70] sm:$0xff] }
  0x20   : > { %1234 = vmatprep.mubr.msk.bf16.mxu0 %vm377_vm1, %v340_v18  ;;  %v344_v30 = vpack.c.bf16 %v319_v28, %v318_v27  ;;  %v321_v32 = vld [vmem:[%s1538_s16 + $0x78] sm:$0xff]  ;;  %v322_v33 = vld [vmem:[%s1538_s16 + $0x80] sm:$0xff]  ;;  %v323_v34 = vld [vmem:[%s1538_s16 + $0x88] sm:$0xff] }
  0x21   : > { %v345_v35 = vpack.c.bf16 %v321_v32, %v320_v31  ;;  %v346_v36 = vpack.c.bf16 %v323_v34, %v322_v33  ;;  %v324_v37 = vld [vmem:[%s1538_s16 + $0x90] sm:$0xff]  ;;  %v325_v38 = vld [vmem:[%s1538_s16 + $0x98] sm:$0xff]  ;;  %v326_v39 = vld [vmem:[%s1538_s16 + $0xa0] sm:$0xff] }
  0x22   : > { %v327_v40 = vld [vmem:[%s1538_s16 + $0xa8] sm:$0xff]  ;;  %v347_v41 = vpack.c.bf16 %v325_v38, %v324_v37  ;;  %v328_v43 = vld [vmem:[%s1538_s16 + $0xb0] sm:$0xff]  ;;  %v329_v44 = vld [vmem:[%s1538_s16 + $0xb8] sm:$0xff] }
  0x23   : > { %v348_v42 = vpack.c.bf16 %v327_v40, %v326_v39  ;;  %v330_v45 = vld [vmem:[%s1538_s16 + $0xc0] sm:$0xff]  ;;  %v331_v46 = vld [vmem:[%s1538_s16 + $0xc8] sm:$0xff]  ;;  %v349_v47 = vpack.c.bf16 %v329_v44, %v328_v43  ;;  %v332_v49 = vld [vmem:[%s1538_s16 + $0xd0] sm:$0xff] }
  0x24   : > { %v350_v48 = vpack.c.bf16 %v331_v46, %v330_v45  ;;  %v333_v50 = vld [vmem:[%s1538_s16 + $0xd8] sm:$0xff]  ;;  %v334_v51 = vld [vmem:[%s1538_s16 + $0xe0] sm:$0xff]  ;;  %v335_v52 = vld [vmem:[%s1538_s16 + $0xe8] sm:$0xff] }
  0x25   : > { %v351_v53 = vpack.c.bf16 %v333_v50, %v332_v49  ;;  %v352_v54 = vpack.c.bf16 %v335_v52, %v334_v51  ;;  %v336_v55 = vld [vmem:[%s1538_s16 + $0xf0] sm:$0xff]  ;;  %v337_v56 = vld [vmem:[%s1538_s16 + $0xf8] sm:$0xff]  ;;  %s908_s16 = sld [smem:[#allocation2]] }
  0x26   : > { %v353_v57 = vpack.c.bf16 %v337_v56, %v336_v55 }
  0x27   : > { %1235 = vmatmul.mubr.msk.bf16.gmra.mrb[4].mxu0 %vm377_vm1, %v341_v23 }
  0x28   : > { %1238 = vmatprep.mubr.msk.bf16.mxu0 %vm377_vm1, %v342_v24 }
  0x2f   : > { %1239 = vmatmul.mubr.msk.bf16.gmra.mrb[8].mxu0 %vm377_vm1, %v343_v29 }
  0x30   : > { %1242 = vmatprep.mubr.msk.bf16.mxu0 %vm377_vm1, %v344_v30 }
  0x37   : > { %1243 = vmatmul.mubr.msk.bf16.gmra.mrb[12].mxu0 %vm377_vm1, %v345_v35 }
  0x38   : > { %1246 = vmatprep.mubr.msk.bf16.mxu0 %vm377_vm1, %v346_v36 }
  0x3f   : > { %1247 = vmatmul.mubr.msk.bf16.gmra.mrb[16].mxu0 %vm377_vm1, %v347_v41 }
  0x40   : > { %1250 = vmatprep.mubr.msk.bf16.mxu0 %vm377_vm1, %v348_v42 }
  0x47   : > { %1251 = vmatmul.mubr.msk.bf16.gmra.mrb[20].mxu0 %vm377_vm1, %v349_v47 }
  0x48   : > { %1254 = vmatprep.mubr.msk.bf16.mxu0 %vm377_vm1, %v350_v48 }
  0x4f   : > { %1255 = vmatmul.mubr.msk.bf16.gmra.mrb[24].mxu0 %vm377_vm1, %v351_v53 }
  0x50   : > { %1258 = vmatprep.mubr.msk.bf16.mxu0 %vm377_vm1, %v352_v54 }
  0x57   : > { %1259 = vmatmul.mubr.msk.bf16.gmra.mrb[28].mxu0 %vm377_vm1, %v353_v57 }
  0xf2   : > { %v1232_v1 = vpop.f32.mrb[0].mxu0 }
  0xf3   : > { %v473_v2 = vadd.f32 %v1232_v1, %v1600_v0  ;;  %v464_v3 = vpop.f32.mrb[1].mxu0 }
  0xf4   : > { %v465_v4 = vadd.f32 %v1600_v0, %v464_v3  ;;  %v1233_v5 = vpop.f32.mrb[2].mxu0 }
  0xf5   : > { %v476_v6 = vadd.f32 %v1233_v5, %v1600_v0  ;;  %v467_v7 = vpop.f32.mrb[3].mxu0  ;;  %v593_v9 = vmax.f32 %v473_v2, 0.0 }
  0xf6   : > { %v468_v8 = vadd.f32 %v1600_v0, %v467_v7  ;;  %v591_v11 = vmax.f32 %v465_v4, 0.0 }
  0xf7   : > { %v594_v10 = vmax.f32 %v476_v6, 0.0 }
  0xf8   : > { %v592_v12 = vmax.f32 %v468_v8, 0.0 }
  0xf9   : > { %v624_v13 = vpack.c.bf16 %v594_v10, %v593_v9 }
  0xfa   : > { %v1236_v14 = vpop.f32.mrb[4].mxu0  ;;  %v623_v15 = vpack.c.bf16 %v592_v12, %v591_v11 }
  0xfb   : > { %v489_v16 = vadd.f32 %v1236_v14, %v1600_v0  ;;  %v480_v17 = vpop.f32.mrb[5].mxu0 }
  0xfc   : > { %v481_v18 = vadd.f32 %v1600_v0, %v480_v17  ;;  %v1237_v19 = vpop.f32.mrb[6].mxu0  ;;  %1266 = vmatprep.mubr.msk.bf16.mxu1 %vm646_vm3, %v623_v15 }
  0xfd   : > { %v492_v20 = vadd.f32 %v1237_v19, %v1600_v0  ;;  %v483_v21 = vpop.f32.mrb[7].mxu0  ;;  %1267 = vmatmul.mubr.msk.bf16.vlgmr.msra.gmra.mrb[0].mxu1 %vm646_vm3, %v624_v13  ;;  %v597_v23 = vmax.f32 %v489_v16, 0.0 }
  0xfe   : > { %v484_v22 = vadd.f32 %v1600_v0, %v483_v21  ;;  %v595_v25 = vmax.f32 %v481_v18, 0.0 }
  0xff   : > { %v598_v24 = vmax.f32 %v492_v20, 0.0 }
 0x100   : > { %v596_v26 = vmax.f32 %v484_v22, 0.0 }
 0x101   : > { %v626_v27 = vpack.c.bf16 %v598_v24, %v597_v23 }
 0x102   : > { %v625_v28 = vpack.c.bf16 %v596_v26, %v595_v25  ;;  %v1240_v29 = vpop.f32.mrb[8].mxu0 }
 0x103   : > { %v505_v30 = vadd.f32 %v1240_v29, %v1600_v0  ;;  %v496_v31 = vpop.f32.mrb[9].mxu0 }
 0x104   : > { %v497_v32 = vadd.f32 %v1600_v0, %v496_v31  ;;  %v1241_v33 = vpop.f32.mrb[10].mxu0  ;;  %1270 = vmatprep.mubr.msk.bf16.mxu1 %vm646_vm3, %v625_v28 }
 0x105   : > { %v508_v34 = vadd.f32 %v1241_v33, %v1600_v0  ;;  %v499_v35 = vpop.f32.mrb[11].mxu0  ;;  %1271 = vmatmul.mubr.msk.bf16.gmra.mrb[4].mxu1 %vm646_vm3, %v626_v27  ;;  %v601_v37 = vmax.f32 %v505_v30, 0.0 }
 0x106   : > { %v500_v36 = vadd.f32 %v1600_v0, %v499_v35  ;;  %v599_v39 = vmax.f32 %v497_v32, 0.0 }
 0x107   : > { %v602_v38 = vmax.f32 %v508_v34, 0.0 }
 0x108   : > { %v600_v40 = vmax.f32 %v500_v36, 0.0 }
 0x109   : > { %v628_v41 = vpack.c.bf16 %v602_v38, %v601_v37 }
 0x10a   : > { %v627_v42 = vpack.c.bf16 %v600_v40, %v599_v39  ;;  %v1244_v43 = vpop.f32.mrb[12].mxu0 }
 0x10b   : > { %v521_v44 = vadd.f32 %v1244_v43, %v1600_v0  ;;  %v512_v45 = vpop.f32.mrb[13].mxu0 }
 0x10c   : > { %v513_v46 = vadd.f32 %v1600_v0, %v512_v45  ;;  %v1245_v47 = vpop.f32.mrb[14].mxu0  ;;  %1274 = vmatprep.mubr.msk.bf16.mxu1 %vm646_vm3, %v627_v42 }
 0x10d   : > { %v524_v48 = vadd.f32 %v1245_v47, %v1600_v0  ;;  %v515_v49 = vpop.f32.mrb[15].mxu0  ;;  %1275 = vmatmul.mubr.msk.bf16.gmra.mrb[8].mxu1 %vm646_vm3, %v628_v41  ;;  %v605_v51 = vmax.f32 %v521_v44, 0.0 }
 0x10e   : > { %v516_v50 = vadd.f32 %v1600_v0, %v515_v49  ;;  %v603_v53 = vmax.f32 %v513_v46, 0.0 }
 0x10f   : > { %v606_v52 = vmax.f32 %v524_v48, 0.0 }
 0x110   : > { %v604_v54 = vmax.f32 %v516_v50, 0.0  ;;  %v368_v50 = vld [vmem:[%s1800_s5] sm:$0x1] }
 0x111   : > { %v630_v55 = vpack.c.bf16 %v606_v52, %v605_v51  ;;  %v1653_v51 = vpack.c.bf16 %v368_v50, %v368_v50 }
 0x112   : > { %v629_v56 = vpack.c.bf16 %v604_v54, %v603_v53  ;;  %v1248_v57 = vpop.f32.mrb[16].mxu0 }
 0x113   : > { %v537_v58 = vadd.f32 %v1248_v57, %v1600_v0  ;;  %v528_v59 = vpop.f32.mrb[17].mxu0 }
 0x114   : > { %v529_v60 = vadd.f32 %v1600_v0, %v528_v59  ;;  %v1249_v61 = vpop.f32.mrb[18].mxu0  ;;  %1278 = vmatprep.mubr.msk.bf16.mxu1 %vm646_vm3, %v629_v56 }
 0x115   : > { %v540_v62 = vadd.f32 %v1249_v61, %v1600_v0  ;;  %v531_v63 = vpop.f32.mrb[19].mxu0  ;;  %1279 = vmatmul.mubr.msk.bf16.gmra.mrb[12].mxu1 %vm646_vm3, %v630_v55  ;;  %v609_v2 = vmax.f32 %v537_v58, 0.0 }
 0x116   : > { %v532_v1 = vadd.f32 %v1600_v0, %v531_v63  ;;  %v607_v4 = vmax.f32 %v529_v60, 0.0 }
 0x117   : > { %v610_v3 = vmax.f32 %v540_v62, 0.0 }
 0x118   : > { %v608_v5 = vmax.f32 %v532_v1, 0.0 }
 0x119   : > { %v632_v6 = vpack.c.bf16 %v610_v3, %v609_v2 }
 0x11a   : > { %v631_v7 = vpack.c.bf16 %v608_v5, %v607_v4  ;;  %v1252_v8 = vpop.f32.mrb[20].mxu0 }
 0x11b   : > { %v553_v9 = vadd.f32 %v1252_v8, %v1600_v0  ;;  %v544_v10 = vpop.f32.mrb[21].mxu0 }
 0x11c   : > { %v545_v11 = vadd.f32 %v1600_v0, %v544_v10  ;;  %1282 = vmatprep.mubr.msk.bf16.mxu1 %vm646_vm3, %v631_v7  ;;  %v1253_v12 = vpop.f32.mrb[22].mxu0 }
 0x11d   : > { %v613_v13 = vmax.f32 %v553_v9, 0.0  ;;  %v556_v14 = vadd.f32 %v1253_v12, %v1600_v0  ;;  %1283 = vmatmul.mubr.msk.bf16.gmra.mrb[16].mxu1 %vm646_vm3, %v632_v6  ;;  %v547_v15 = vpop.f32.mrb[23].mxu0 }
 0x11e   : > { %v611_v16 = vmax.f32 %v545_v11, 0.0  ;;  %v548_v17 = vadd.f32 %v1600_v0, %v547_v15 }
 0x11f   : > { %v614_v18 = vmax.f32 %v556_v14, 0.0 }
 0x120   : > { %v612_v19 = vmax.f32 %v548_v17, 0.0 }
 0x121   : > { %v634_v20 = vpack.c.bf16 %v614_v18, %v613_v13 }
 0x122   : > { %v633_v21 = vpack.c.bf16 %v612_v19, %v611_v16  ;;  %v1256_v22 = vpop.f32.mrb[24].mxu0 }
 0x123   : > { %v569_v23 = vadd.f32 %v1256_v22, %v1600_v0  ;;  %v560_v24 = vpop.f32.mrb[25].mxu0 }
 0x124   : > { %1286 = vmatprep.mubr.msk.bf16.mxu1 %vm646_vm3, %v633_v21  ;;  %v561_v25 = vadd.f32 %v1600_v0, %v560_v24  ;;  %v1257_v26 = vpop.f32.mrb[26].mxu0 }
 0x125   : > { %1287 = vmatmul.mubr.msk.bf16.gmra.mrb[20].mxu1 %vm646_vm3, %v634_v20  ;;  %v617_v27 = vmax.f32 %v569_v23, 0.0  ;;  %v572_v28 = vadd.f32 %v1257_v26, %v1600_v0  ;;  %v563_v29 = vpop.f32.mrb[27].mxu0 }
 0x126   : > { %v615_v30 = vmax.f32 %v561_v25, 0.0  ;;  %v564_v31 = vadd.f32 %v1600_v0, %v563_v29 }
 0x127   : > { %v618_v32 = vmax.f32 %v572_v28, 0.0 }
 0x128   : > { %v616_v33 = vmax.f32 %v564_v31, 0.0 }
 0x129   : > { %v636_v34 = vpack.c.bf16 %v618_v32, %v617_v27 }
 0x12a   : > { %v635_v35 = vpack.c.bf16 %v616_v33, %v615_v30  ;;  %v1260_v36 = vpop.f32.mrb[28].mxu0 }
 0x12b   : > { %v585_v37 = vadd.f32 %v1260_v36, %v1600_v0  ;;  %v576_v38 = vpop.f32.mrb[29].mxu0 }
 0x12c   : > { %1290 = vmatprep.mubr.msk.bf16.mxu1 %vm646_vm3, %v635_v35  ;;  %v577_v39 = vadd.f32 %v1600_v0, %v576_v38  ;;  %v1261_v40 = vpop.f32.mrb[30].mxu0 }
 0x12d   : > { %1291 = vmatmul.mubr.msk.bf16.gmra.mrb[24].mxu1 %vm646_vm3, %v636_v34  ;;  %v621_v41 = vmax.f32 %v585_v37, 0.0  ;;  %v588_v42 = vadd.f32 %v1261_v40, %v1600_v0  ;;  %v579_v43 = vpop.f32.mrb[31].mxu0 }
 0x12e   : > { %v619_v44 = vmax.f32 %v577_v39, 0.0  ;;  %v580_v45 = vadd.f32 %v1600_v0, %v579_v43  ;;  %v1660_v0 = vld [vmem:[%s1799_s4] ss:$0 sm:$0xff] }
 0x12f   : > { %v622_v46 = vmax.f32 %v588_v42, 0.0 }
 0x130   : > { %v620_v47 = vmax.f32 %v580_v45, 0.0 }
 0x131   : > { %v638_v48 = vpack.c.bf16 %v622_v46, %v621_v41 }
 0x132   : > { %v637_v49 = vpack.c.bf16 %v620_v47, %v619_v44 }
 0x134   : > { %1294 = vmatprep.mubr.msk.bf16.mxu1 %vm646_vm3, %v637_v49 }
 0x135   : > { %1295 = vmatmul.mubr.msk.bf16.gmra.mrb[28].mxu1 %vm646_vm3, %v638_v48 }
 0x136   : > { %1222 = vmatprep.mubr.msk.bf16.mxu1 %vm910_vm4, %v1653_v51 }
 0x1d0   : > { %v1268_v52 = vpop.f32.mrb[0].mxu1 }
 0x1d1   : > { %v742_v53 = vadd.f32 %v1268_v52, %v1660_v0  ;;  %v733_v54 = vpop.f32.mrb[1].mxu1 }
 0x1d2   : > { %v734_v55 = vadd.f32 %v1660_v0, %v733_v54  ;;  %v1269_v56 = vpop.f32.mrb[2].mxu1 }
 0x1d3   : > { %v745_v57 = vadd.f32 %v1269_v56, %v1660_v0  ;;  %v736_v58 = vpop.f32.mrb[3].mxu1  ;;  %v862_v60 = vmax.f32 %v742_v53, 0.0 }
 0x1d4   : > { %v737_v59 = vadd.f32 %v1660_v0, %v736_v58  ;;  %v860_v62 = vmax.f32 %v734_v55, 0.0 }
 0x1d5   : > { %v863_v61 = vmax.f32 %v745_v57, 0.0 }
 0x1d6   : > { %v861_v63 = vmax.f32 %v737_v59, 0.0 }
 0x1d7   : > { %v1666_v1 = vpack.c.bf16 %v863_v61, %v862_v60 }
 0x1d8   : > { %v1668_v2 = vpack.c.bf16 %v861_v63, %v860_v62  ;;  %v1272_v3 = vpop.f32.mrb[4].mxu1 }
 0x1d9   : > { %v758_v4 = vadd.f32 %v1272_v3, %v1660_v0  ;;  %v749_v5 = vpop.f32.mrb[5].mxu1 }
 0x1da   : > { %v750_v6 = vadd.f32 %v1660_v0, %v749_v5  ;;  %v1273_v7 = vpop.f32.mrb[6].mxu1 }
 0x1db   : > { %v761_v8 = vadd.f32 %v1273_v7, %v1660_v0  ;;  %v752_v9 = vpop.f32.mrb[7].mxu1  ;;  %v866_v11 = vmax.f32 %v758_v4, 0.0  ;;  %v915_v4 = vsel %vm910_vm4, %v1668_v2, 0  ;;  %v918_v2 = vsel %vm910_vm4, %v1666_v1, 0 }
 0x1dc   : > { %v753_v10 = vadd.f32 %v1660_v0, %v752_v9  ;;  %v864_v13 = vmax.f32 %v750_v6, 0.0 }
 0x1dd   : > { %v867_v12 = vmax.f32 %v761_v8, 0.0 }
 0x1de   : > { %v865_v14 = vmax.f32 %v753_v10, 0.0 }
 0x1df   : > { %v1674_v15 = vpack.c.bf16 %v867_v12, %v866_v11 }
 0x1e0   : > { %v1676_v16 = vpack.c.bf16 %v865_v14, %v864_v13  ;;  %v1276_v17 = vpop.f32.mrb[8].mxu1 }
 0x1e1   : > { %v774_v18 = vadd.f32 %v1276_v17, %v1660_v0  ;;  %v765_v19 = vpop.f32.mrb[9].mxu1 }
 0x1e2   : > { %v766_v20 = vadd.f32 %v1660_v0, %v765_v19  ;;  %v1277_v21 = vpop.f32.mrb[10].mxu1 }
 0x1e3   : > { %v777_v22 = vadd.f32 %v1277_v21, %v1660_v0  ;;  %v768_v23 = vpop.f32.mrb[11].mxu1  ;;  %v870_v25 = vmax.f32 %v774_v18, 0.0 }
 0x1e4   : > { %v769_v24 = vadd.f32 %v1660_v0, %v768_v23  ;;  %v868_v27 = vmax.f32 %v766_v20, 0.0 }
 0x1e5   : > { %v871_v26 = vmax.f32 %v777_v22, 0.0 }
 0x1e6   : > { %v869_v28 = vmax.f32 %v769_v24, 0.0 }
 0x1e7   : > { %v1682_v29 = vpack.c.bf16 %v871_v26, %v870_v25 }
 0x1e8   : > { %v1684_v30 = vpack.c.bf16 %v869_v28, %v868_v27  ;;  %v1280_v31 = vpop.f32.mrb[12].mxu1 }
 0x1e9   : > { %v790_v32 = vadd.f32 %v1280_v31, %v1660_v0  ;;  %v781_v33 = vpop.f32.mrb[13].mxu1 }
 0x1ea   : > { %v782_v34 = vadd.f32 %v1660_v0, %v781_v33  ;;  %v1281_v35 = vpop.f32.mrb[14].mxu1 }
 0x1eb   : > { %v793_v36 = vadd.f32 %v1281_v35, %v1660_v0  ;;  %v784_v37 = vpop.f32.mrb[15].mxu1  ;;  %v874_v39 = vmax.f32 %v790_v32, 0.0 }
 0x1ec   : > { %v785_v38 = vadd.f32 %v1660_v0, %v784_v37  ;;  %v872_v41 = vmax.f32 %v782_v34, 0.0  ;;  %v921_v34 = vsel %vm910_vm4, %v1676_v16, 0  ;;  %v924_v16 = vsel %vm910_vm4, %v1674_v15, 0 }
 0x1ed   : > { %v875_v40 = vmax.f32 %v793_v36, 0.0 }
 0x1ee   : > { %v873_v42 = vmax.f32 %v785_v38, 0.0 }
 0x1ef   : > { %v1690_v43 = vpack.c.bf16 %v875_v40, %v874_v39 }
 0x1f0   : > { %v1692_v44 = vpack.c.bf16 %v873_v42, %v872_v41  ;;  %v1284_v45 = vpop.f32.mrb[16].mxu1 }
 0x1f1   : > { %v806_v46 = vadd.f32 %v1284_v45, %v1660_v0  ;;  %v797_v47 = vpop.f32.mrb[17].mxu1  ;;  %v936_v15 = vsel %vm910_vm4, %v1690_v43, 0 }
 0x1f2   : > { %v798_v48 = vadd.f32 %v1660_v0, %v797_v47  ;;  %v1285_v49 = vpop.f32.mrb[18].mxu1 }
 0x1f3   : > { %v809_v50 = vadd.f32 %v1285_v49, %v1660_v0  ;;  %v800_v52 = vpop.f32.mrb[19].mxu1  ;;  %v878_v54 = vmax.f32 %v806_v46, 0.0  ;;  %v933_v49 = vsel %vm910_vm4, %v1692_v44, 0 }
 0x1f4   : > { %v801_v53 = vadd.f32 %v1660_v0, %v800_v52  ;;  %v876_v56 = vmax.f32 %v798_v48, 0.0  ;;  %v927_v48 = vsel %vm910_vm4, %v1684_v30, 0  ;;  %v909_v30 = vstv %s908_s16 }
 0x1f5   : > { %v879_v55 = vmax.f32 %v809_v50, 0.0 }
 0x1f6   : > { %v877_v57 = vmax.f32 %v801_v53, 0.0 }
 0x1f7   : > { %v901_v58 = vpack.c.bf16 %v879_v55, %v878_v54 }
 0x1f8   : > { %v900_v59 = vpack.c.bf16 %v877_v57, %v876_v56  ;;  %v1288_v60 = vpop.f32.mrb[20].mxu1 }
 0x1f9   : > { %v822_v61 = vadd.f32 %v1288_v60, %v1660_v0  ;;  %v813_v62 = vpop.f32.mrb[21].mxu1 }
 0x1fa   : > { %v814_v63 = vadd.f32 %v1660_v0, %v813_v62  ;;  %1300 = vmatprep.subr.msk.bf16.mxu1 %vm910_vm4, %v900_v59  ;;  %v1289_v3 = vpop.f32.mrb[22].mxu1 }
 0x1fb   : > { %v882_v5 = vmax.f32 %v822_v61, 0.0  ;;  %v825_v6 = vadd.f32 %v1289_v3, %v1660_v0  ;;  %1207 = vmatpush3.bf16.xpose.msra.mxu1 %v915_v4  ;;  %v816_v7 = vpop.f32.mrb[23].mxu1  ;;  %v1021_v61 = vlaneseq }
 0x1fc   : > { %v880_v8 = vmax.f32 %v814_v63, 0.0  ;;  %v817_v9 = vadd.f32 %v1660_v0, %v816_v7  ;;  %1301 = vmatprep.subr.msk.bf16.mxu1 %vm910_vm4, %v901_v58 }
 0x1fd   : > { %v883_v10 = vmax.f32 %v825_v6, 0.0  ;;  %v1022_v63 = vshrl.u32 %v1021_v61, 7  ;;  %vm1035_vm5 = vcmp.lt.s32.totalorder %v1021_v61, 256 }
 0x1fe   : > { %v881_v11 = vmax.f32 %v817_v9, 0.0 }
 0x1ff   : > { %v903_v12 = vpack.c.bf16 %v883_v10, %v882_v5 }
 0x200   : > { %v902_v13 = vpack.c.bf16 %v881_v11, %v880_v8  ;;  %v1292_v14 = vpop.f32.mrb[24].mxu1 }
 0x201   : > { %v838_v17 = vadd.f32 %v1292_v14, %v1660_v0  ;;  %v829_v18 = vpop.f32.mrb[25].mxu1 }
 0x202   : > { %v830_v19 = vadd.f32 %v1660_v0, %v829_v18  ;;  %v1293_v20 = vpop.f32.mrb[26].mxu1 }
 0x203   : > { %1209 = vmatpush3.bf16.xpose.msra.mxu1 %v918_v2  ;;  %v886_v21 = vmax.f32 %v838_v17, 0.0  ;;  %v841_v22 = vadd.f32 %v1293_v20, %v1660_v0  ;;  %v832_v23 = vpop.f32.mrb[27].mxu1 }
 0x204   : > { %1302 = vmatprep.subr.msk.bf16.mxu1 %vm910_vm4, %v902_v13  ;;  %v884_v24 = vmax.f32 %v830_v19, 0.0  ;;  %v833_v25 = vadd.f32 %v1660_v0, %v832_v23 }
 0x205   : > { %v887_v26 = vmax.f32 %v841_v22, 0.0 }
 0x206   : > { %v885_v27 = vmax.f32 %v833_v25, 0.0 }
 0x207   : > { %v905_v28 = vpack.c.bf16 %v887_v26, %v886_v21 }
 0x208   : > { %v904_v31 = vpack.c.bf16 %v885_v27, %v884_v24  ;;  %v1296_v32 = vpop.f32.mrb[28].mxu1 }
 0x209   : > { %v854_v1 = vadd.f32 %v1296_v32, %v1660_v0  ;;  %v845_v33 = vpop.f32.mrb[29].mxu1 }
 0x20a   : > { %v846_v35 = vadd.f32 %v1660_v0, %v845_v33  ;;  %v1297_v36 = vpop.f32.mrb[30].mxu1 }
 0x20b   : > { %1211 = vmatpush3.bf16.xpose.msra.mxu1 %v921_v34  ;;  %v890_v37 = vmax.f32 %v854_v1, 0.0  ;;  %v857_v38 = vadd.f32 %v1297_v36, %v1660_v0  ;;  %v848_v39 = vpop.f32.mrb[31].mxu1 }
 0x20c   : > { %1303 = vmatprep.subr.msk.bf16.mxu1 %vm910_vm4, %v903_v12  ;;  %v888_v40 = vmax.f32 %v846_v35, 0.0  ;;  %v849_v41 = vadd.f32 %v1660_v0, %v848_v39  ;;  %v930_v0 = vsel %vm910_vm4, %v1682_v29, 0 }
 0x20d   : > { %v891_v42 = vmax.f32 %v857_v38, 0.0 }
 0x20e   : > { %v889_v45 = vmax.f32 %v849_v41, 0.0 }
 0x20f   : > { %v907_v46 = vpack.c.bf16 %v891_v42, %v890_v37 }
 0x210   : > { %v906_v47 = vpack.c.bf16 %v889_v45, %v888_v40 }
 0x213   : > { %1213 = vmatpush3.bf16.xpose.msra.mxu1 %v924_v16 }
 0x214   : > { %1304 = vmatprep.subr.msk.bf16.mxu1 %vm910_vm4, %v904_v31 }
 0x21b   : > { %1215 = vmatpush3.bf16.xpose.msra.mxu1 %v927_v48 }
 0x21c   : > { %1305 = vmatprep.subr.msk.bf16.mxu1 %vm910_vm4, %v905_v28 }
 0x223   : > { %1217 = vmatpush3.bf16.xpose.msra.mxu1 %v930_v0 }
 0x224   : > { %1306 = vmatprep.subr.msk.bf16.mxu1 %vm910_vm4, %v906_v47 }
 0x22b   : > { %1219 = vmatpush3.bf16.xpose.msra.mxu1 %v933_v49 }
 0x22c   : > { %1307 = vmatprep.subr.msk.bf16.mxu1 %vm910_vm4, %v907_v46 }
 0x233   : > { %1221 = vmatpush3.bf16.xpose.msra.mxu1 %v936_v15 }
 0x23a   : > { %1223 = vmatmul.mubr.msk.bf16.vlgmr.msra.gmra.mrb[32].mxu1 %vm910_vm4, %v1653_v51  ;;  %v1419_v51 = vmov 1966171168  }
 0x23b   : > { %v1019_v60 = vunpack.c.l.s4 %v1419_v51 }
 0x23d   : > { %v1020_v62 = vunpack.c.0.s8 %v1019_v60 }
 0x23f   : > { %v1023_v4 = vsub.s32 %v1020_v62, %v1022_v63 }
 0x30d   : > { %v996_v29 = vpop.f32.mrb[32].mxu1 }
 0x30e   : > { %v997_v50 = vadd.f32 %v996_v29, %v909_v30  ;;  %v998_v52 = vpop.f32.mrb[33].mxu1 }
 0x30f   : > { %v999_v53 = vadd.f32 %v998_v52, %v909_v30  ;;  %v1000_v54 = vpop.f32.mrb[34].mxu1 }
 0x310   : > { %v1159_v55 = vmul.f32 -1.442695, %v997_v50  ;;  %v1001_v44 = vpop.f32.mrb[35].mxu1 }
 0x311   : > { %v1160_v56 = vmul.f32 -1.442695, %v999_v53 }
 0x312   : > { %1347 = vpow2.f32 %v1159_v55 }
 0x313   : > { %1349 = vpow2.f32 %v1160_v56 }
 0x31c   : > { %v1348_v57 = vpop.eup %1347 }
 0x31d   : > { %v1350_v43 = vpop.eup %1349  ;;  %v1009_v58 = vadd.f32 1.0, %v1348_v57 }
 0x31e   : > { %v1010_v59 = vadd.f32 1.0, %v1350_v43 }
 0x31f   : > { %1351 = vrcp.f32 %v1009_v58 }
 0x320   : > { %1353 = vrcp.f32 %v1010_v59 }
 0x329   : > { %v1352_v3 = vpop.eup %1351 }
 0x32a   : > { %v1354_v5 = vpop.eup %1353 }
 0x32b   : > { %v1017_v6 = vcombine.low %v1352_v3, %v1354_v5  ;;  %1045 = sbr.rel (!%p1502_p5) target bundleno = 845 (0x34d), region = 52 }
 0x32d   : > { %v1024_v7 = vrot.slane %v1017_v6, %v1023_v4 }
 0x32f   : > { %v1031_v8 = vrot.slane %v1024_v7, %v1023_v4 }
 0x331   : > { %1037 = vst.msk [vmem:[%s285_s18] sm:$0x3] %vm1035_vm5, %v1031_v8 }
 0x332   : > { %s1810_s22 = smov (!%p1048_p11, %s1047_s22), 2 }
 0x333   : > { %s1746_s23 = sshll.u32 %s1810_s22, 4 }
 0x334   : > { %s1052_s24 = ssub.s32 32, %s1746_s23 }
 0x335   : > { %1053 = vsyncadd %s1741_s19, %s1052_s24  ;;  %p1164_p12 = scmp.ne.s32.totalorder %s1746_s23, 0  ;;  %s1755_s12 = scalar_lea.hbm %s1802_s7, %s1522_s20 }
 0x336   : > { %s1058_s9 = sshll.u32 %s285_s18, 4  ;;  %s1420_s10 = smov [#allocation3]   ;;  %s1059_s9 = int_to_ptr.vmem [resolvable:$true] %s1058_s9 }
 0x337   : > { %s1355_s6 = scalar_lea.vmem %s1059_s9, %s1746_s23  ;;  %s1359_s14 = sshll.u32 %s1420_s10, 4  ;;  %s1360_s14 = int_to_ptr.vmem [resolvable:$false] %s1359_s14 }
 0x338   : > { %p1356_p13 = scmp.ne.s32.totalorder %s1059_s9, %s1355_s6  ;;  %s1361_s15 = scalar_lea.vmem %s1360_s14, 64 }
 0x339   : > { %p1362_p2 = scmp.lt.s32.totalorder %s1059_s9, %s1360_s14  ;;  %p1363_p3 = scmp.lt.s32.totalorder %s1361_s15, %s1355_s6 }
 0x33a   : > { %p1357_p0 = pnand %p1356_p13, %p1164_p12 }
 0x33b   : > { %p1364_p4 = por %p1363_p3, %p1362_p2 }
 0x33c   : > { %p1358_p1 = pneg %p1357_p0 }
 0x33e   : > { %p1365_p5 = pnand %p1364_p4, %p1358_p1 }
 0x340   : > { %1368 = shalt.err (!%p1365_p5)
}
 0x341   : > { %s1369_s20 = scalar_lea.hbm %s1755_s12, %s1746_s23  ;;  %s1373_s18 = scalar_lea.hbm %s1802_s7, 48 }
 0x342   : > { %p1370_p7 = scmp.ne.s32.totalorder %s1755_s12, %s1369_s20  ;;  %p1374_p10 = scmp.lt.u32.totalorder %s1755_s12, %s1802_s7 }
 0x343   : > { %p1375_p11 = scmp.lt.u32.totalorder %s1373_s18, %s1369_s20  ;;  %p1377_p0 = scmp.lt.u32.totalorder %s1369_s20, %s1755_s12 }
 0x344   : > { %p1371_p8 = pnand %p1370_p7, %p1164_p12 }
 0x345   : > { %p1376_p13 = por %p1375_p11, %p1374_p10 }
 0x346   : > { %p1372_p9 = pneg %p1371_p8 }
 0x347   : > { %p1378_p1 = por %p1377_p0, %p1376_p13 }
 0x349   : > { %p1379_p2 = pnand %p1378_p1, %p1372_p9 }
 0x34b   : > { %1382 = shalt.err (!%p1379_p2)
}
 0x34c   : > { %1061 = dma.vmem_to_hbm [thread:$0]  (%p1164_p12), %s1059_s9, %s1746_s23, %s1755_s12, %s1741_s19  }
 0x34d PF: > { %p1313_p3 = scmp.ge.s32.totalorder %s1417_s29, 2  ;;  %s1070_s24 = sand.u32 1, %s1405_s26  }
 0x34e   : > { %s1071_s25 = scalar_lea.sflag [#allocation4], %s1070_s24 }
 0x34f   : > { %p1310_p4 = pnand %p1313_p3, %p1506_p6 }
 0x351   : > { %1400 = dma.done.wait (!%p1310_p4), %s1071_s25, 32  }
 0x352   : > { %1402 = vsyncadd (!%p1310_p4), %s1071_s25, 4294967264  ;;  %p18_p5 = scmp.ge.s32.totalorder %s1489_s8, 4   ;;  %s1805_s26 = smov %s1409_s27 }
 0x353   : > { %s1806_s27 = smov %s1413_s28  ;;  %s1807_s28 = smov %s1500_s11 }
 0x354   : > { %s1808_s29 = smov %s1489_s8  ;;  %20 = sbr.rel (!%p18_p5) target bundleno = 5 (0x5), region = 83 }
 0x35b   :  { %1076 = vsyncpa [#allocation4], 1 }
 0x35c   :  { %1078 = vsyncpa [#allocation4 + $0x1], 1 }

</bundles_post_ra>
